<compile_context>
chip_gen: v7x
topology: tpu7x:2x2x1
jax: 0.10.0
libtpu: 0.0.40
codegen_flags: <defaults>
</compile_context>

<pallas_src>
import functools

import jax
import jax.numpy as jnp
from jax.experimental import pallas as pl
from jax.experimental.pallas import tpu as pltpu

TEMPERATURE = 0.07   # ContrastiveHead temperature
LOSS_LAMBDA = 0.5
MOMENTUM = 0.5       # memory-bank update momentum
EPS = 1e-12
LANE = 128           # TPU lane width
VMEM_LIMIT = 48 * 1024 * 1024   # leave headroom even on v7x's 64 MiB VMEM


def _pick_tile(dim, target):
    """Largest divisor of `dim` that is <= target and a multiple of 8.

    Falls back to the full dim (which always satisfies the TPU (8,128) block
    rule for the second-minor axis)."""
    if dim <= target:
        return dim
    t = (target // 8) * 8
    while t >= 8:
        if dim % t == 0:
            return t
        t -= 8
    return dim


# ---------------------------------------------------------------------------
# Kernel A: backbone (1x1 conv + ReLU + GAP) + neck (linear) + L2 normalize
#   grid = (N tiles, HW tiles);  HW is a reduction axis carried in VMEM scratch
# ---------------------------------------------------------------------------
def backbone_neck_kernel(x_ref, w1_ref, b1_ref, w2_ref, b2_ref, q_ref, acc_ref,
                         *, inv_hw):
    j = pl.program_id(1)

    @pl.when(j == 0)
    def _init():
        acc_ref[...] = jnp.zeros(acc_ref.shape, acc_ref.dtype)

    tn, thw, c = x_ref.shape
    d1 = acc_ref.shape[1]
    # thw is a multiple of 8 (or the full HW), so these leading-dim merges do
    # not cross (8,128) tile boundaries.
    x2 = x_ref[...].reshape(tn * thw, c)                              # (TN*THW, C)
    h = jnp.dot(x2, w1_ref[...], preferred_element_type=jnp.float32)  # MXU
    h = jnp.maximum(h + b1_ref[...], 0.0)                             # ReLU (VPU)
    acc_ref[...] += jnp.sum(h.reshape(tn, thw, d1), axis=1)           # partial GAP sum

    @pl.when(j == pl.num_programs(1) - 1)
    def _fin():
        g = acc_ref[...] * inv_hw                                     # GAP -> (TN, D1)
        q = jnp.dot(g, w2_ref[...], preferred_element_type=jnp.float32) + b2_ref[...]
        sumsq = jnp.sum(q * q, axis=-1, keepdims=True)
        # rsqrt -> EUP slot; 1/max(||q||, eps) == rsqrt(max(sumsq, eps^2))
        q_ref[...] = q * jax.lax.rsqrt(jnp.maximum(sumsq, EPS * EPS))


def backbone_neck(x, w1, b1, w2, b2, *, block_hw=128):
    """x: (N, HW, C) channels-last-flattened image batch -> (N, F) L2-normalized."""
    n, hw, c = x.shape
    d1 = w1.shape[1]
    f = w2.shape[1]
    # Demo-sized N fits in one tile; for production N tile in multiples of 8 and
    # pad C/D1/F to multiples of 128 (256 on v6e/v7x) + use bf16 inputs there.
    tn = n
    thw = _pick_tile(hw, block_hw)
    grid = (n // tn, hw // thw)
    kernel = functools.partial(backbone_neck_kernel, inv_hw=1.0 / hw)
    return pl.pallas_call(
        kernel,
        out_shape=jax.ShapeDtypeStruct((n, f), jnp.float32),
        grid=grid,
        in_specs=[
            pl.BlockSpec((tn, thw, c), lambda i, j: (i, j, 0)),
            pl.BlockSpec((c, d1), lambda i, j: (0, 0)),
            pl.BlockSpec((1, d1), lambda i, j: (0, 0)),
            pl.BlockSpec((d1, f), lambda i, j: (0, 0)),
            pl.BlockSpec((1, f), lambda i, j: (0, 0)),
        ],
        out_specs=pl.BlockSpec((tn, f), lambda i, j: (i, 0)),
        scratch_shapes=[pltpu.VMEM((tn, d1), jnp.float32)],
        compiler_params=pltpu.CompilerParams(
            dimension_semantics=("parallel", "arbitrary"),
            vmem_limit_bytes=VMEM_LIMIT),
    )(x, w1, b1, w2, b2)


# ---------------------------------------------------------------------------
# Kernel B: contrastive NCE loss, tiled over K with online logsumexp
#   grid = (N tiles, K tiles);  running max / running sum in VMEM scratch
# ---------------------------------------------------------------------------
def contrastive_kernel(q_ref, pos_ref, neg_ref, loss_ref, m_sc, s_sc, *, inv_temp):
    kj = pl.program_id(1)
    q = q_ref[...]                                                    # (TN, F)

    @pl.when(kj == 0)
    def _init():
        m_sc[...] = jnp.full(m_sc.shape, -jnp.inf, m_sc.dtype)
        s_sc[...] = jnp.zeros(s_sc.shape, s_sc.dtype)

    # Negative logits on the MXU: batched (1,F) x (TK,F)^T per sample,
    # i.e. torch.bmm(neg_feat, q.unsqueeze(2)).  1/T folded into one multiply.
    s = jnp.einsum('nqf,nkf->nqk', q[:, None, :], neg_ref[...],
                   preferred_element_type=jnp.float32) * inv_temp      # (TN, 1, TK)

    # Online (flash-style) logsumexp over the K axis.
    m_prev = m_sc[...]                                                # (TN, 1)
    m_new = jnp.maximum(m_prev, jnp.max(s, axis=-1))                  # (TN, 1)
    p = jnp.exp(s - m_new[:, :, None])                                # (TN, 1, TK)
    s_sc[...] = s_sc[...] * jnp.exp(m_prev - m_new) + jnp.sum(p, axis=-1)
    m_sc[...] = m_new

    @pl.when(kj == pl.num_programs(1) - 1)
    def _fin():
        pos = jnp.sum(pos_ref[...] * q, axis=-1, keepdims=True) * inv_temp   # (TN, 1)
        m_fin = jnp.maximum(m_sc[...], pos)
        lse = m_fin + jnp.log(s_sc[...] * jnp.exp(m_sc[...] - m_fin)
                              + jnp.exp(pos - m_fin))
        # CE with label 0 == lse - pos; store lane-dense (full 128-wide vst),
        # the wrapper reads column 0.
        loss_ref[...] = jnp.broadcast_to(lse - pos, loss_ref.shape)


def contrastive_head(q, pos_feat, neg_feat, *, temperature=TEMPERATURE, block_k=512):
    """Returns the mean NCE loss (positives at label 0, temperature T)."""
    n, f = q.shape
    k = neg_feat.shape[1]
    tn = n                       # demo-sized; tile in multiples of 8 for big N
    tk = _pick_tile(k, block_k)  # K tiles pipelined as an 'arbitrary' reduction axis
    grid = (n // tn, k // tk)
    kernel = functools.partial(contrastive_kernel, inv_temp=1.0 / temperature)
    loss = pl.pallas_call(
        kernel,
        out_shape=jax.ShapeDtypeStruct((n, LANE), jnp.float32),
        grid=grid,
        in_specs=[
            pl.BlockSpec((tn, f), lambda i, kj: (i, 0)),
            pl.BlockSpec((tn, f), lambda i, kj: (i, 0)),
            pl.BlockSpec((tn, tk, f), lambda i, kj: (i, kj, 0)),
        ],
        out_specs=pl.BlockSpec((tn, LANE), lambda i, kj: (i, 0)),
        scratch_shapes=[pltpu.VMEM((tn, 1), jnp.float32),   # running max
                        pltpu.VMEM((tn, 1), jnp.float32)],  # running sum
        compiler_params=pltpu.CompilerParams(
            dimension_semantics=("parallel", "arbitrary"),
            vmem_limit_bytes=VMEM_LIMIT),
    )(q, pos_feat, neg_feat)
    return jnp.mean(loss[:, 0])


# ---------------------------------------------------------------------------
# Glue (plain JAX)
# ---------------------------------------------------------------------------
def memory_update(bank, idx, feat, momentum=MOMENTUM):
    # TODO(synk): exact memory-bank momentum config comes from the builder;
    # standard NPID momentum update + renormalize is used here.  Could be a
    # Pallas kernel with input_output_aliases to avoid copying the full bank.
    old = bank[idx]
    new = momentum * old + (1.0 - momentum) * feat
    new = new / jnp.maximum(jnp.linalg.norm(new, axis=-1, keepdims=True), EPS)
    return bank.at[idx].set(new)


def forward_train(img2, idx, params, bank_g, bank_c, key, k=4096,
                  num_crops=(1, 1), block_k=512):
    assert isinstance(img2, list)
    # torch.unique_consecutive on crop resolutions + cumsum -> consecutive groups
    res = [int(im.shape[-1]) for im in img2]
    groups, start = [], 0
    for end in range(1, len(img2) + 1):
        if end == len(img2) or res[end] != res[start]:
            groups.append((start, end))
            start = end

    feats = []
    for s, e in groups:
        x = jnp.concatenate(img2[s:e], axis=0)                 # (n, C, H, W)  NCHW
        n, c, hh, ww = x.shape
        # Layout plumbing in the wrapper: channels-last, spatial flattened so C
        # sits on the lane axis; the kernel block stays (TN, THW, C).
        x = jnp.transpose(x, (0, 2, 3, 1)).reshape(n, hh * ww, c)
        feats.append(backbone_neck(x, params["w1"], params["b1"],
                                   params["w2"], params["b2"]))
    q = jnp.concatenate(feats, axis=0)                         # normalized rows
    bs, feat_dim = q.shape
    q_sslp = q[: bs // 2]
    q_l = q[bs // 2:]
    bs_g = q_sslp.shape[0]
    bs_l = q_l.shape[0]

    # memory_bank.multinomial.draw -> uniform negative sampling
    bank_len = bank_g.shape[0]
    neg_idx = jax.random.randint(key, (bs_g * k,), 0, bank_len)

    # TODO(synk): fuse these bank gathers into Kernel B (scalar-prefetched
    # indices + manual DMA from the HBM-resident bank) to avoid the extra
    # (N,K,F) HBM round trip at production K.
    pos_feat = bank_g[idx]
    neg_feat = bank_g[neg_idx].reshape(bs_g, k, feat_dim)
    pos_feat_l = bank_c[idx]
    k_l = k // num_crops[1]  # TODO(synk): only shape-consistent for num_crops[1]==1
    neg_feat_l = bank_c[neg_idx].reshape(bs_l, k_l, feat_dim)

    loss_npid = contrastive_head(q_sslp, pos_feat, neg_feat, block_k=block_k)
    loss_mcrop = contrastive_head(q_l, pos_feat_l, neg_feat_l, block_k=block_k)

    losses = {
        "loss_contra_single": loss_npid * LOSS_LAMBDA,
        "loss_contra_mcrop": loss_mcrop * LOSS_LAMBDA,
    }
    new_bank_g = memory_update(bank_g, idx, q_sslp)
    new_bank_c = memory_update(bank_c, idx, q_l)
    return losses, new_bank_g, new_bank_c


# ---------------------------------------------------------------------------
# Pure-JAX references (correctness checks)
# ---------------------------------------------------------------------------
def _reference_backbone_neck(x, w1, b1, w2, b2):
    h = jnp.maximum(jnp.einsum('nhc,cd->nhd', x, w1) + b1, 0.0)
    g = jnp.mean(h, axis=1)
    q = g @ w2 + b2
    return q / jnp.maximum(jnp.linalg.norm(q, axis=-1, keepdims=True), EPS)


def _reference_contrastive(q, pos_feat, neg_feat, temperature=TEMPERATURE):
    pos = jnp.sum(pos_feat * q, axis=-1, keepdims=True) / temperature
    neg = jnp.einsum('nkf,nf->nk', neg_feat, q) / temperature
    logits = jnp.concatenate([pos, neg], axis=1)
    m = jnp.max(logits, axis=1, keepdims=True)
    lse = m + jnp.log(jnp.sum(jnp.exp(logits - m), axis=1, keepdims=True))
    return jnp.mean(lse - pos)


# ---------------------------------------------------------------------------
if __name__ == "__main__":
    key = jax.random.PRNGKey(0)
    kig, kil, kw1, kw2, kbg, kbc, kneg = jax.random.split(key, 7)

    B, C, D1, F, L, K = 2, 4, 32, 32, 64, 16

    # multi-crop input list: 1 global-resolution group + 1 local-resolution group
    img_global = jax.random.normal(kig, (B, C, 16, 16), jnp.float32)
    img_local = jax.random.normal(kil, (B, C, 8, 8), jnp.float32)
    img2 = [img_global, img_local]
    idx = jnp.array([3, 11], dtype=jnp.int32)

    # deterministic (kaiming-style) parameter init
    params = {
        "w1": jax.random.normal(kw1, (C, D1), jnp.float32) * (2.0 / C) ** 0.5,
        "b1": jnp.zeros((1, D1), jnp.float32),
        "w2": jax.random.normal(kw2, (D1, F), jnp.float32) * (2.0 / D1) ** 0.5,
        "b2": jnp.zeros((1, F), jnp.float32),
    }

    def l2norm(v):
        return v / jnp.maximum(jnp.linalg.norm(v, axis=-1, keepdims=True), EPS)

    bank_g = l2norm(jax.random.normal(kbg, (L, F), jnp.float32))
    bank_c = l2norm(jax.random.normal(kbc, (L, F), jnp.float32))

    # --- kernel-level checks against pure-JAX references --------------------
    x_chk = jnp.transpose(img_global, (0, 2, 3, 1)).reshape(B, 16 * 16, C)
    q_pal = backbone_neck(x_chk, params["w1"], params["b1"],
                          params["w2"], params["b2"], block_hw=128)  # 2 HW steps
    q_ref = _reference_backbone_neck(x_chk, params["w1"], params["b1"],
                                     params["w2"], params["b2"])
    assert jnp.allclose(q_pal, q_ref, atol=1e-4, rtol=1e-4), "backbone/neck mismatch"

    kneg_chk = jax.random.fold_in(kneg, 1)
    neg_idx_chk = jax.random.randint(kneg_chk, (B * K,), 0, L)
    pos_chk = bank_g[idx]
    neg_chk = bank_g[neg_idx_chk].reshape(B, K, F)
    loss_pal = contrastive_head(q_pal, pos_chk, neg_chk, block_k=8)  # 2 K steps
    loss_ref = _reference_contrastive(q_pal, pos_chk, neg_chk)
    assert jnp.allclose(loss_pal, loss_ref, atol=1e-4, rtol=1e-4), "contrastive mismatch"

    # --- full forward_train --------------------------------------------------
    losses, new_bank_g, new_bank_c = forward_train(
        img2, idx, params, bank_g, bank_c, kneg, k=K, num_crops=(1, 1), block_k=8)
    jax.block_until_ready((losses, new_bank_g, new_bank_c, q_pal, loss_pal))
    print("KERNEL_OK")
</pallas_src>

<mosaic_0001>
module attributes {stable_mosaic.version = 11 : i64} {
  func.func @backbone_neck_kernel(%arg0: i32, %arg1: i32, %arg2: memref<2x128x4xf32, #tpu.memory_space<vmem>>, %arg3: memref<4x32xf32, #tpu.memory_space<vmem>>, %arg4: memref<1x32xf32, #tpu.memory_space<vmem>>, %arg5: memref<32x32xf32, #tpu.memory_space<vmem>>, %arg6: memref<1x32xf32, #tpu.memory_space<vmem>>, %arg7: memref<2x32xf32, #tpu.memory_space<vmem>>, %arg8: memref<2x32xf32, #tpu.memory_space<vmem>>) attributes {dimension_semantics = [#tpu.dimension_semantics<parallel>, #tpu.dimension_semantics<arbitrary>], iteration_bounds = array<i64: 1, 2>, scalar_prefetch = 0 : i64, scratch_operands = 1 : i64, tpu.core_type = #tpu.core_type<tc>, window_params = [{transform_indices = @transform_0, window_bounds = array<i64: 2, 128, 4>}, {pipeline_mode = #tpu.pipeline_mode<synchronous>, transform_indices = @transform_1, window_bounds = array<i64: 4, 32>}, {pipeline_mode = #tpu.pipeline_mode<synchronous>, transform_indices = @transform_2, window_bounds = array<i64: 1, 32>}, {pipeline_mode = #tpu.pipeline_mode<synchronous>, transform_indices = @transform_3, window_bounds = array<i64: 32, 32>}, {pipeline_mode = #tpu.pipeline_mode<synchronous>, transform_indices = @transform_4, window_bounds = array<i64: 1, 32>}, {transform_indices = @transform_5, window_bounds = array<i64: 2, 32>}]} {
    %c0_i32 = arith.constant 0 : i32
    %0 = arith.cmpi eq, %arg1, %c0_i32 : i32
    %1 = arith.extui %0 : i1 to i32
    %c0_i32_0 = arith.constant 0 : i32
    %2 = arith.cmpi ne, %1, %c0_i32_0 : i32
    scf.if %2 {
      %cst_14 = arith.constant 0.000000e+00 : f32
      %20 = vector.broadcast %cst_14 : f32 to vector<2x32xf32>
      %c0_15 = arith.constant 0 : index
      %c0_16 = arith.constant 0 : index
      %21 = vector.load %arg8[%c0_15, %c0_16] : memref<2x32xf32, #tpu.memory_space<vmem>>, vector<2x32xf32>
      tpu.vector_store %arg8[%c0_15, %c0_16], %20 {strides = array<i32>} : memref<2x32xf32, #tpu.memory_space<vmem>>, vector<2x32xf32>,
    } else {
    }
    %c0 = arith.constant 0 : index
    %c0_1 = arith.constant 0 : index
    %c0_2 = arith.constant 0 : index
    %3 = vector.load %arg2[%c0, %c0_1, %c0_2] : memref<2x128x4xf32, #tpu.memory_space<vmem>>, vector<2x128x4xf32>
    %4 = vector.shape_cast %3 : vector<2x128x4xf32> to vector<256x4xf32>
    %c0_3 = arith.constant 0 : index
    %c0_4 = arith.constant 0 : index
    %5 = vector.load %arg3[%c0_3, %c0_4] : memref<4x32xf32, #tpu.memory_space<vmem>>, vector<4x32xf32>
    %cst = arith.constant dense<0.000000e+00> : vector<256x32xf32>
    %6 = tpu.matmul %4, %5, %cst {dimension_numbers = #tpu.dot_dimension_numbers<[1], [0], [0], [1], [0, 0, 1, 1], [], []>} : vector<256x4xf32>, vector<4x32xf32>, vector<256x32xf32> -> vector<256x32xf32>
    %c0_5 = arith.constant 0 : index
    %c0_6 = arith.constant 0 : index
    %7 = vector.load %arg4[%c0_5, %c0_6] : memref<1x32xf32, #tpu.memory_space<vmem>>, vector<1x32xf32>
    %8 = vector.broadcast %7 : vector<1x32xf32> to vector<256x32xf32>
    %9 = arith.addf %6, %8 : vector<256x32xf32>
    %cst_7 = arith.constant 0.000000e+00 : f32
    %10 = vector.broadcast %cst_7 : f32 to vector<256x32xf32>
    %11 = arith.maximumf %9, %10 : vector<256x32xf32>
    %c0_8 = arith.constant 0 : index
    %c0_9 = arith.constant 0 : index
    %12 = vector.load %arg8[%c0_8, %c0_9] : memref<2x32xf32, #tpu.memory_space<vmem>>, vector<2x32xf32>
    %13 = vector.shape_cast %11 : vector<256x32xf32> to vector<2x128x32xf32>
    %cst_10 = arith.constant dense<0.000000e+00> : vector<2x32xf32>
    %14 = vector.multi_reduction <add>, %13, %cst_10 [1] : vector<2x128x32xf32> to vector<2x32xf32>
    %15 = arith.addf %12, %14 : vector<2x32xf32>
    %c0_11 = arith.constant 0 : index
    %c0_12 = arith.constant 0 : index
    %16 = vector.load %arg8[%c0_11, %c0_12] : memref<2x32xf32, #tpu.memory_space<vmem>>, vector<2x32xf32>
    tpu.vector_store %arg8[%c0_11, %c0_12], %15 {strides = array<i32>} : memref<2x32xf32, #tpu.memory_space<vmem>>, vector<2x32xf32>,
    %c1_i32 = arith.constant 1 : i32
    %17 = arith.cmpi eq, %arg1, %c1_i32 : i32
    %18 = arith.extui %17 : i1 to i32
    %c0_i32_13 = arith.constant 0 : i32
    %19 = arith.cmpi ne, %18, %c0_i32_13 : i32
    scf.if %19 {
      %c0_14 = arith.constant 0 : index
      %c0_15 = arith.constant 0 : index
      %20 = vector.load %arg8[%c0_14, %c0_15] : memref<2x32xf32, #tpu.memory_space<vmem>>, vector<2x32xf32>
      %cst_16 = arith.constant 3.906250e-03 : f32
      %21 = vector.broadcast %cst_16 : f32 to vector<2x32xf32>
      %22 = arith.mulf %20, %21 : vector<2x32xf32>
      %c0_17 = arith.constant 0 : index
      %c0_18 = arith.constant 0 : index
      %23 = vector.load %arg5[%c0_17, %c0_18] : memref<32x32xf32, #tpu.memory_space<vmem>>, vector<32x32xf32>
      %cst_19 = arith.constant dense<0.000000e+00> : vector<2x32xf32>
      %24 = tpu.matmul %22, %23, %cst_19 {dimension_numbers = #tpu.dot_dimension_numbers<[1], [0], [0], [1], [0, 0, 1, 1], [], []>} : vector<2x32xf32>, vector<32x32xf32>, vector<2x32xf32> -> vector<2x32xf32>
      %c0_20 = arith.constant 0 : index
      %c0_21 = arith.constant 0 : index
      %25 = vector.load %arg6[%c0_20, %c0_21] : memref<1x32xf32, #tpu.memory_space<vmem>>, vector<1x32xf32>
      %26 = vector.broadcast %25 : vector<1x32xf32> to vector<2x32xf32>
      %27 = arith.addf %24, %26 : vector<2x32xf32>
      %28 = arith.mulf %27, %27 : vector<2x32xf32>
      %cst_22 = arith.constant dense<0.000000e+00> : vector<2xf32>
      %29 = vector.multi_reduction <add>, %28, %cst_22 [1] : vector<2x32xf32> to vector<2xf32>
      %30 = vector.shape_cast %29 : vector<2xf32> to vector<2x1xf32>
      %cst_23 = arith.constant 1.000000e-24 : f32
      %31 = vector.broadcast %cst_23 : f32 to vector<2x1xf32>
      %32 = arith.maximumf %30, %31 : vector<2x1xf32>
      %33 = math.rsqrt %32 : vector<2x1xf32>
      %34 = vector.broadcast %33 : vector<2x1xf32> to vector<2x32xf32>
      %35 = arith.mulf %27, %34 : vector<2x32xf32>
      %c0_24 = arith.constant 0 : index
      %c0_25 = arith.constant 0 : index
      %36 = vector.load %arg7[%c0_24, %c0_25] : memref<2x32xf32, #tpu.memory_space<vmem>>, vector<2x32xf32>
      tpu.vector_store %arg7[%c0_24, %c0_25], %35 {strides = array<i32>} : memref<2x32xf32, #tpu.memory_space<vmem>>, vector<2x32xf32>,
    } else {
    }
    return
  }
  func.func @transform_0(%arg0: i32, %arg1: i32) -> (i32, i32, i32) {
    %c0_i32 = arith.constant 0 : i32
    %c0_i32_0 = arith.constant 0 : i32
    return %arg0, %arg1, %c0_i32 : i32, i32, i32
  }
  func.func @transform_1(%arg0: i32, %arg1: i32) -> (i32, i32) {
    %c0_i32 = arith.constant 0 : i32
    %c0_i32_0 = arith.constant 0 : i32
    %c0_i32_1 = arith.constant 0 : i32
    return %c0_i32, %c0_i32_0 : i32, i32
  }
  func.func @transform_2(%arg0: i32, %arg1: i32) -> (i32, i32) {
    %c0_i32 = arith.constant 0 : i32
    %c0_i32_0 = arith.constant 0 : i32
    %c0_i32_1 = arith.constant 0 : i32
    return %c0_i32, %c0_i32_0 : i32, i32
  }
  func.func @transform_3(%arg0: i32, %arg1: i32) -> (i32, i32) {
    %c0_i32 = arith.constant 0 : i32
    %c0_i32_0 = arith.constant 0 : i32
    %c0_i32_1 = arith.constant 0 : i32
    return %c0_i32, %c0_i32_0 : i32, i32
  }
  func.func @transform_4(%arg0: i32, %arg1: i32) -> (i32, i32) {
    %c0_i32 = arith.constant 0 : i32
    %c0_i32_0 = arith.constant 0 : i32
    %c0_i32_1 = arith.constant 0 : i32
    return %c0_i32, %c0_i32_0 : i32, i32
  }
  func.func @transform_5(%arg0: i32, %arg1: i32) -> (i32, i32) {
    %c0_i32 = arith.constant 0 : i32
    %c0_i32_0 = arith.constant 0 : i32
    return %arg0, %c0_i32 : i32, i32
  }
}

</mosaic_0001>

<bundles_post_ra>
// kernel: tpu_custom_call.1
= control target key start
LH: loop header
LB: loop body
LE: loop exit
PB: predicated region body
PF: predicated region fallthrough
CT: control target
= control target key end

     0   :  { %10 = vsyncpa [#allocation5], 0  ;;  %s1364_s18 = smov 0   ;;  %s1366_s19 = smov 0   ;;  %s1681_s0 = inlined_call_operand.vmem [shape: f32[2,256,4], index: 0, kind: input, shape index: {}]   ;;  %s1682_s1 = inlined_call_operand.vmem [shape: f32[4,32], index: 1, kind: input, shape index: {}]   ;;  %s1683_s2 = inlined_call_operand.vmem [shape: f32[1,32], index: 2, kind: input, shape index: {}]   ;;  %s1684_s3 = inlined_call_operand.vmem [shape: f32[32,32], index: 3, kind: input, shape index: {}]   ;;  %s1685_s4 = inlined_call_operand.vmem [shape: f32[1,32], index: 4, kind: input, shape index: {}]   ;;  %s1686_s5 = inlined_call_operand.hbm [shape: f32[2,32], index: 5, kind: output, shape index: {}]  }
   0x1   :  { %s1368_s20 = smov 0   ;;  %s1370_s21 = smov 0  }
   0x2   :  { %s1372_s22 = smov 0  }
   0x3 LB: > { %s1048_s23 = sadd.s32 4294967295, %s1327_s22   ;;  %s25_s24 = sadd.s32 1, %s1323_s21  ;;  %s1327_s22 = sphi %s1372_s22, %s16_s22   ;;  %s1323_s21 = sphi %s1370_s21, %s1691_s21   ;;  %s1319_s20 = sphi %s1368_s20, %s1690_s20   ;;  %s1315_s19 = sphi %s1366_s19, %s1689_s19   ;;  %s1311_s18 = sphi %s1364_s18, %s1688_s18  }
   0x4   : > { %p26_p0 = scmp.ge.s32.totalorder %s25_s24, 2  ;;  %p44_p1 = scmp.ne.s32.totalorder %s1315_s19, %s1311_s18 }
   0x5   : > { %p45_p2 = scmp.eq.s32.totalorder %s1327_s22, 0  ;;  %s37_s26 = sadd.s32 1, %s1315_s19 }
   0x6   : > { %s1693_s24 = smov (%p26_p0, %s25_s24), 0  ;;  %p1050_p5 = scmp.ge.s32.totalorder %s1327_s22, 2 }
   0x7   : > { %p46_p3 = por %p45_p2, %p44_p1  ;;  %s33_s25 = ssub.s32 %s1323_s21, %s1693_s24 }
   0x8   : > { %p35_p4 = scmp.eq.s32.totalorder %s33_s25, 0  ;;  %192 = sbr.rel (%p1050_p5) target bundleno = 35 (0x23), region = 32 }
   0xa   : > { %s1400_s27 = scalar_select %p35_p4, %s1315_s19, %s37_s26  }
   0xf   : > { %195 = sbr.rel (!%p46_p3) target bundleno = 35 (0x23), region = 36  ;;  %s197_s28 = sand.u32 (%p46_p3), 1, %s1315_s19  }
  0x10   : > { %s1098_s29 = sshll.u32 (%p46_p3), %s1323_s21, 7  ;;  %s1051_s30 = sshll.u32 (%p46_p3), %s197_s28, 8 }
  0x11   : > { %s1408_s8 = scalar_lea.vmem (%p46_p3), %s1681_s0, %s1098_s29  ;;  %s1413_s9 = scalar_lea.vmem (%p46_p3), [#allocation3], %s1051_s30 }
  0x12   : > { %v295_v0 = vld [vmem:[%s1408_s8] sm:$0xff] (%p46_p3)  ;;  %v297_v1 = vld [vmem:[%s1408_s8 + $0x8] sm:$0xff] (%p46_p3)  ;;  %v299_v2 = vld [vmem:[%s1408_s8 + $0x10] sm:$0xff] (%p46_p3) }
  0x13   : > { %296 = vst [vmem:[%s1413_s9] sm:$0xff] (%p46_p3), %v295_v0  ;;  %298 = vst [vmem:[%s1413_s9 + $0x8] sm:$0xff] (%p46_p3), %v297_v1  ;;  %v301_v3 = vld [vmem:[%s1408_s8 + $0x18] sm:$0xff] (%p46_p3)  ;;  %v303_v4 = vld [vmem:[%s1408_s8 + $0x20] sm:$0xff] (%p46_p3) }
  0x14   : > { %300 = vst [vmem:[%s1413_s9 + $0x10] sm:$0xff] (%p46_p3), %v299_v2  ;;  %v305_v5 = vld [vmem:[%s1408_s8 + $0x28] sm:$0xff] (%p46_p3)  ;;  %302 = vst [vmem:[%s1413_s9 + $0x18] sm:$0xff] (%p46_p3), %v301_v3  ;;  %v307_v6 = vld [vmem:[%s1408_s8 + $0x30] sm:$0xff] (%p46_p3) }
  0x15   : > { %304 = vst [vmem:[%s1413_s9 + $0x20] sm:$0xff] (%p46_p3), %v303_v4  ;;  %306 = vst [vmem:[%s1413_s9 + $0x28] sm:$0xff] (%p46_p3), %v305_v5  ;;  %v309_v7 = vld [vmem:[%s1408_s8 + $0x38] sm:$0xff] (%p46_p3)  ;;  %v311_v8 = vld [vmem:[%s1408_s8 + $0x40] sm:$0xff] (%p46_p3) }
  0x16   : > { %308 = vst [vmem:[%s1413_s9 + $0x30] sm:$0xff] %v307_v6  ;;  %310 = vst [vmem:[%s1413_s9 + $0x38] sm:$0xff] %v309_v7  ;;  %v313_v9 = vld [vmem:[%s1408_s8 + $0x48] sm:$0xff]  ;;  %v315_v10 = vld [vmem:[%s1408_s8 + $0x50] sm:$0xff] }
  0x17   : > { %312 = vst [vmem:[%s1413_s9 + $0x40] sm:$0xff] %v311_v8  ;;  %v317_v11 = vld [vmem:[%s1408_s8 + $0x58] sm:$0xff]  ;;  %314 = vst [vmem:[%s1413_s9 + $0x48] sm:$0xff] %v313_v9  ;;  %v319_v12 = vld [vmem:[%s1408_s8 + $0x60] sm:$0xff] }
  0x18   : > { %316 = vst [vmem:[%s1413_s9 + $0x50] sm:$0xff] %v315_v10  ;;  %318 = vst [vmem:[%s1413_s9 + $0x58] sm:$0xff] %v317_v11  ;;  %v321_v13 = vld [vmem:[%s1408_s8 + $0x68] sm:$0xff]  ;;  %v323_v14 = vld [vmem:[%s1408_s8 + $0x70] sm:$0xff] }
  0x19   : > { %320 = vst [vmem:[%s1413_s9 + $0x60] sm:$0xff] %v319_v12  ;;  %322 = vst [vmem:[%s1413_s9 + $0x68] sm:$0xff] %v321_v13  ;;  %v325_v15 = vld [vmem:[%s1408_s8 + $0x78] sm:$0xff]  ;;  %v327_v16 = vld [vmem:[%s1408_s8 + $0x100] sm:$0xff] }
  0x1a   : > { %324 = vst [vmem:[%s1413_s9 + $0x70] sm:$0xff] %v323_v14  ;;  %v329_v17 = vld [vmem:[%s1408_s8 + $0x108] sm:$0xff]  ;;  %326 = vst [vmem:[%s1413_s9 + $0x78] sm:$0xff] %v325_v15  ;;  %v331_v18 = vld [vmem:[%s1408_s8 + $0x110] sm:$0xff] }
  0x1b   : > { %328 = vst [vmem:[%s1413_s9 + $0x80] sm:$0xff] %v327_v16  ;;  %330 = vst [vmem:[%s1413_s9 + $0x88] sm:$0xff] %v329_v17  ;;  %v333_v19 = vld [vmem:[%s1408_s8 + $0x118] sm:$0xff]  ;;  %v335_v20 = vld [vmem:[%s1408_s8 + $0x120] sm:$0xff] }
  0x1c   : > { %332 = vst [vmem:[%s1413_s9 + $0x90] sm:$0xff] %v331_v18  ;;  %334 = vst [vmem:[%s1413_s9 + $0x98] sm:$0xff] %v333_v19  ;;  %v337_v21 = vld [vmem:[%s1408_s8 + $0x128] sm:$0xff]  ;;  %v339_v22 = vld [vmem:[%s1408_s8 + $0x130] sm:$0xff] }
  0x1d   : > { %336 = vst [vmem:[%s1413_s9 + $0xa0] sm:$0xff] %v335_v20  ;;  %v341_v23 = vld [vmem:[%s1408_s8 + $0x138] sm:$0xff]  ;;  %338 = vst [vmem:[%s1413_s9 + $0xa8] sm:$0xff] %v337_v21  ;;  %v343_v24 = vld [vmem:[%s1408_s8 + $0x140] sm:$0xff] }
  0x1e   : > { %340 = vst [vmem:[%s1413_s9 + $0xb0] sm:$0xff] %v339_v22  ;;  %342 = vst [vmem:[%s1413_s9 + $0xb8] sm:$0xff] %v341_v23  ;;  %v345_v25 = vld [vmem:[%s1408_s8 + $0x148] sm:$0xff]  ;;  %v347_v26 = vld [vmem:[%s1408_s8 + $0x150] sm:$0xff] }
  0x1f   : > { %344 = vst [vmem:[%s1413_s9 + $0xc0] sm:$0xff] %v343_v24  ;;  %346 = vst [vmem:[%s1413_s9 + $0xc8] sm:$0xff] %v345_v25  ;;  %v349_v27 = vld [vmem:[%s1408_s8 + $0x158] sm:$0xff]  ;;  %v351_v28 = vld [vmem:[%s1408_s8 + $0x160] sm:$0xff] }
  0x20   : > { %348 = vst [vmem:[%s1413_s9 + $0xd0] sm:$0xff] %v347_v26  ;;  %v353_v29 = vld [vmem:[%s1408_s8 + $0x168] sm:$0xff]  ;;  %350 = vst [vmem:[%s1413_s9 + $0xd8] sm:$0xff] %v349_v27  ;;  %v355_v30 = vld [vmem:[%s1408_s8 + $0x170] sm:$0xff] }
  0x21   : > { %352 = vst [vmem:[%s1413_s9 + $0xe0] sm:$0xff] %v351_v28  ;;  %354 = vst [vmem:[%s1413_s9 + $0xe8] sm:$0xff] %v353_v29  ;;  %v357_v31 = vld [vmem:[%s1408_s8 + $0x178] sm:$0xff] }
  0x22   : > { %356 = vst [vmem:[%s1413_s9 + $0xf0] sm:$0xff] %v355_v30  ;;  %358 = vst [vmem:[%s1413_s9 + $0xf8] sm:$0xff] %v357_v31 }
  0x23 PF: > { %p1054_p6 = scmp.ge.s32.totalorder %s1327_s22, 1  ;;  %p363_p7 = scmp.lt.s32.totalorder %s1327_s22, 3 }
  0x25   : > { %p364_p8 = pnand %p1054_p6, %p363_p7 }
  0x26   : > { %s370_s10 = sand.u32 (!%p364_p8), 1, %s1311_s18   ;;  %p1056_p9 = scmp.ne.s32.totalorder (!%p364_p8), %s1319_s20, 0 }
  0x27   : > { %367 = sbr.rel (%p364_p8) target bundleno = 733 (0x2dd), region = 74  ;;  %s1055_s11 = sshll.u32 (!%p364_p8), %s370_s10, 8 }
  0x28   : > { %s1479_s12 = scalar_lea.vmem (!%p364_p8), [#allocation3], %s1055_s11 }
  0x2e   : > { %397 = sbr.rel (%p1056_p9) target bundleno = 53 (0x35), region = 82  ;;  %vm398_vm0 = vcmask (!%p1056_p9), 254976   ;;  %v1329_v32 = vmov (!%p1056_p9), 0.0  }
  0x2f   : > { %399 = vst.msk [vmem:[#allocation2] sm:$0x3] (!%p1056_p9), %vm398_vm0, %v1329_v32 }
  0x35 PF: > { %v432_v33 = vld [vmem:[%s1682_s1] sm:$0xf]  ;;  %vm537_vm1 = vcmask 1043456   ;;  %vm440_vm2 = vcmask 31744   ;;  %v401_v36 = vld [vmem:[%s1479_s12 + $0x8] sm:$0xff]  ;;  %v402_v38 = vld [vmem:[%s1479_s12 + $0x10] sm:$0xff] }
  0x36   : > { %v400_v34 = vld [vmem:[%s1479_s12] sm:$0xff]  ;;  %1137 = vmatprep.subr.msk.mxu0 %vm537_vm1, %v432_v33  ;;  %1204 = vmatprep.subr.msk.mxu1 %vm537_vm1, %v432_v33  ;;  %v417_v37 = vld [vmem:[%s1479_s12 + $0x88] sm:$0xff]  ;;  %v418_v39 = vld [vmem:[%s1479_s12 + $0x90] sm:$0xff]  ;;  %vm799_vm3 = vcmask 261120   ;;  %vm876_vm4 = vcmask 1041409   ;;  %vm880_vm5 = vcmask 254976  }
  0x37   : > { %v416_v35 = vld [vmem:[%s1479_s12 + $0x80] sm:$0xff]  ;;  %1138 = vmatpush3.msk.msra.mxu0 %vm537_vm1, %v432_v33  ;;  %1205 = vmatpush3.msk.msra.mxu1 %vm537_vm1, %v432_v33  ;;  %v403_v40 = vld [vmem:[%s1479_s12 + $0x18] sm:$0xff]  ;;  %v405_v44 = vld [vmem:[%s1479_s12 + $0x28] sm:$0xff]  ;;  %p1091_p10 = scmp.ne.s32.totalorder %s1319_s20, 1 }
  0x38   : > { %1139 = vmatprep.mubr.msk.f32.mxu0 %vm440_vm2, %v400_v34  ;;  %1163 = vmatprep.mubr.msk.f32.mxu1 %vm440_vm2, %v416_v35  ;;  %v419_v41 = vld [vmem:[%s1479_s12 + $0x98] sm:$0xff]  ;;  %v404_v42 = vld [vmem:[%s1479_s12 + $0x20] sm:$0xff]  ;;  %v421_v45 = vld [vmem:[%s1479_s12 + $0xa8] sm:$0xff]  ;;  %vm1331_vm6 = vmmov (!%p1091_p10), 0  }
  0x39   : > { %1140 = vmatmul.mubr.msk.f32.vlgmr.msra.gmra.mrb[0].mxu0 %vm440_vm2, %v401_v36  ;;  %1164 = vmatmul.mubr.msk.f32.vlgmr.msra.gmra.mrb[0].mxu1 %vm440_vm2, %v417_v37  ;;  %v420_v43 = vld [vmem:[%s1479_s12 + $0xa0] sm:$0xff]  ;;  %v406_v46 = vld [vmem:[%s1479_s12 + $0x30] sm:$0xff]  ;;  %v407_v48 = vld [vmem:[%s1479_s12 + $0x38] sm:$0xff] }
  0x3a   : > { %1142 = vmatprep.mubr.msk.f32.mxu0 %vm440_vm2, %v402_v38  ;;  %1166 = vmatprep.mubr.msk.f32.mxu1 %vm440_vm2, %v418_v39  ;;  %v422_v47 = vld [vmem:[%s1479_s12 + $0xb0] sm:$0xff]  ;;  %v423_v49 = vld [vmem:[%s1479_s12 + $0xb8] sm:$0xff]  ;;  %v408_v50 = vld [vmem:[%s1479_s12 + $0x40] sm:$0xff] }
  0x3b   : > { %v424_v51 = vld [vmem:[%s1479_s12 + $0xc0] sm:$0xff]  ;;  %v409_v52 = vld [vmem:[%s1479_s12 + $0x48] sm:$0xff]  ;;  %v410_v54 = vld [vmem:[%s1479_s12 + $0x50] sm:$0xff] }
  0x3c   : > { %v425_v53 = vld [vmem:[%s1479_s12 + $0xc8] sm:$0xff]  ;;  %v426_v55 = vld [vmem:[%s1479_s12 + $0xd0] sm:$0xff]  ;;  %v411_v56 = vld [vmem:[%s1479_s12 + $0x58] sm:$0xff] }
  0x3d   : > { %1143 = vmatmul.mubr.msk.f32.gmra.mrb[2].mxu0 %vm440_vm2, %v403_v40  ;;  %1167 = vmatmul.mubr.msk.f32.gmra.mrb[2].mxu1 %vm440_vm2, %v419_v41  ;;  %v427_v57 = vld [vmem:[%s1479_s12 + $0xd8] sm:$0xff]  ;;  %v412_v58 = vld [vmem:[%s1479_s12 + $0x60] sm:$0xff]  ;;  %v413_v60 = vld [vmem:[%s1479_s12 + $0x68] sm:$0xff] }
  0x3e   : > { %1145 = vmatprep.mubr.msk.f32.mxu0 %vm440_vm2, %v404_v42  ;;  %1169 = vmatprep.mubr.msk.f32.mxu1 %vm440_vm2, %v420_v43  ;;  %v428_v59 = vld [vmem:[%s1479_s12 + $0xe0] sm:$0xff]  ;;  %v429_v61 = vld [vmem:[%s1479_s12 + $0xe8] sm:$0xff]  ;;  %v414_v62 = vld [vmem:[%s1479_s12 + $0x70] sm:$0xff] }
  0x3f   : > { %v430_v63 = vld [vmem:[%s1479_s12 + $0xf0] sm:$0xff]  ;;  %v415_v0 = vld [vmem:[%s1479_s12 + $0x78] sm:$0xff] }
  0x40   : > { %v431_v1 = vld [vmem:[%s1479_s12 + $0xf8] sm:$0xff] }
  0x41   : > { %1146 = vmatmul.mubr.msk.f32.gmra.mrb[4].mxu0 %vm440_vm2, %v405_v44  ;;  %1170 = vmatmul.mubr.msk.f32.gmra.mrb[4].mxu1 %vm440_vm2, %v421_v45  ;;  %v1552_v2 = vld [vmem:[%s1683_s2] ss:$0 sm:$0xff] }
  0x42   : > { %1148 = vmatprep.mubr.msk.f32.mxu0 %vm440_vm2, %v406_v46  ;;  %1172 = vmatprep.mubr.msk.f32.mxu1 %vm440_vm2, %v422_v47 }
  0x45   : > { %1149 = vmatmul.mubr.msk.f32.gmra.mrb[6].mxu0 %vm440_vm2, %v407_v48  ;;  %1173 = vmatmul.mubr.msk.f32.gmra.mrb[6].mxu1 %vm440_vm2, %v423_v49 }
  0x46   : > { %1151 = vmatprep.mubr.msk.f32.mxu0 %vm440_vm2, %v408_v50  ;;  %1175 = vmatprep.mubr.msk.f32.mxu1 %vm440_vm2, %v424_v51 }
  0x49   : > { %1152 = vmatmul.mubr.msk.f32.gmra.mrb[8].mxu0 %vm440_vm2, %v409_v52  ;;  %1176 = vmatmul.mubr.msk.f32.gmra.mrb[8].mxu1 %vm440_vm2, %v425_v53 }
  0x4a   : > { %1154 = vmatprep.mubr.msk.f32.mxu0 %vm440_vm2, %v410_v54  ;;  %1178 = vmatprep.mubr.msk.f32.mxu1 %vm440_vm2, %v426_v55 }
  0x4d   : > { %1155 = vmatmul.mubr.msk.f32.gmra.mrb[10].mxu0 %vm440_vm2, %v411_v56  ;;  %1179 = vmatmul.mubr.msk.f32.gmra.mrb[10].mxu1 %vm440_vm2, %v427_v57 }
  0x4e   : > { %1157 = vmatprep.mubr.msk.f32.mxu0 %vm440_vm2, %v412_v58  ;;  %1181 = vmatprep.mubr.msk.f32.mxu1 %vm440_vm2, %v428_v59 }
  0x51   : > { %1158 = vmatmul.mubr.msk.f32.gmra.mrb[12].mxu0 %vm440_vm2, %v413_v60  ;;  %1182 = vmatmul.mubr.msk.f32.gmra.mrb[12].mxu1 %vm440_vm2, %v429_v61 }
  0x52   : > { %1160 = vmatprep.mubr.msk.f32.mxu0 %vm440_vm2, %v414_v62  ;;  %1184 = vmatprep.mubr.msk.f32.mxu1 %vm440_vm2, %v430_v63 }
  0x55   : > { %1161 = vmatmul.mubr.msk.f32.gmra.mrb[14].mxu0 %vm440_vm2, %v415_v0  ;;  %1185 = vmatmul.mubr.msk.f32.gmra.mrb[14].mxu1 %vm440_vm2, %v431_v1 }
 0x10c   : > { %v1141_v3 = vpop.f32.mrb[0].mxu0  ;;  %v1165_v4 = vpop.f32.mrb[0].mxu1 }
 0x10d   : > { %v613_v5 = vadd.f32 %v1141_v3, %v1552_v2  ;;  %v693_v6 = vadd.f32 %v1165_v4, %v1552_v2  ;;  %v607_v7 = vpop.f32.mrb[1].mxu0  ;;  %v687_v8 = vpop.f32.mrb[1].mxu1 }
 0x10e   : > { %v608_v9 = vadd.f32 %v1552_v2, %v607_v7  ;;  %v688_v10 = vadd.f32 %v1552_v2, %v687_v8 }
 0x10f   : > { %v767_v11 = vmax.f32 %v613_v5, 0.0  ;;  %v783_v12 = vmax.f32 %v693_v6, 0.0 }
 0x110   : > { %v766_v13 = vmax.f32 %v608_v9, 0.0  ;;  %v782_v14 = vmax.f32 %v688_v10, 0.0  ;;  %v1144_v15 = vpop.f32.mrb[2].mxu0  ;;  %v1168_v16 = vpop.f32.mrb[2].mxu1 }
 0x111   : > { %v801_v17 = vsel %vm799_vm3, %v767_v11, 0.0  ;;  %v838_v18 = vsel %vm799_vm3, %v783_v12, 0.0  ;;  %v623_v19 = vadd.f32 %v1144_v15, %v1552_v2  ;;  %v703_v20 = vadd.f32 %v1168_v16, %v1552_v2  ;;  %v617_v21 = vpop.f32.mrb[3].mxu0  ;;  %v697_v22 = vpop.f32.mrb[3].mxu1 }
 0x112   : > { %v800_v23 = vsel %vm799_vm3, %v766_v13, 0.0  ;;  %v837_v24 = vsel %vm799_vm3, %v782_v14, 0.0  ;;  %v618_v25 = vadd.f32 %v1552_v2, %v617_v21  ;;  %v698_v26 = vadd.f32 %v1552_v2, %v697_v22 }
 0x113   : > { %v802_v27 = vadd.f32 %v801_v17, %v800_v23  ;;  %v839_v28 = vadd.f32 %v838_v18, %v837_v24  ;;  %v769_v29 = vmax.f32 %v623_v19, 0.0  ;;  %v785_v30 = vmax.f32 %v703_v20, 0.0 }
 0x114   : > { %v768_v31 = vmax.f32 %v618_v25, 0.0  ;;  %v784_v32 = vmax.f32 %v698_v26, 0.0  ;;  %v1147_v33 = vpop.f32.mrb[4].mxu0  ;;  %v1171_v34 = vpop.f32.mrb[4].mxu1 }
 0x115   : > { %v633_v35 = vadd.f32 %v1147_v33, %v1552_v2  ;;  %v713_v36 = vadd.f32 %v1171_v34, %v1552_v2  ;;  %v627_v37 = vpop.f32.mrb[5].mxu0  ;;  %v707_v38 = vpop.f32.mrb[5].mxu1  ;;  %v805_v43 = vsel %vm799_vm3, %v769_v29, 0.0  ;;  %v842_v44 = vsel %vm799_vm3, %v785_v30, 0.0 }
 0x116   : > { %v803_v39 = vsel %vm799_vm3, %v768_v31, 0.0  ;;  %v840_v40 = vsel %vm799_vm3, %v784_v32, 0.0  ;;  %v628_v41 = vadd.f32 %v1552_v2, %v627_v37  ;;  %v708_v42 = vadd.f32 %v1552_v2, %v707_v38 }
 0x117   : > { %v804_v45 = vadd.f32 %v803_v39, %v802_v27  ;;  %v841_v46 = vadd.f32 %v840_v40, %v839_v28  ;;  %v771_v47 = vmax.f32 %v633_v35, 0.0  ;;  %v787_v48 = vmax.f32 %v713_v36, 0.0 }
 0x118   : > { %v770_v49 = vmax.f32 %v628_v41, 0.0  ;;  %v786_v50 = vmax.f32 %v708_v42, 0.0  ;;  %v1150_v51 = vpop.f32.mrb[6].mxu0  ;;  %v1174_v52 = vpop.f32.mrb[6].mxu1 }
 0x119   : > { %v806_v53 = vadd.f32 %v805_v43, %v804_v45  ;;  %v843_v54 = vadd.f32 %v842_v44, %v841_v46  ;;  %v637_v55 = vpop.f32.mrb[7].mxu0  ;;  %v717_v56 = vpop.f32.mrb[7].mxu1  ;;  %v643_v59 = vadd.f32 %v1150_v51, %v1552_v2  ;;  %v723_v60 = vadd.f32 %v1174_v52, %v1552_v2 }
 0x11a   : > { %v807_v57 = vsel %vm799_vm3, %v770_v49, 0.0  ;;  %v844_v58 = vsel %vm799_vm3, %v786_v50, 0.0  ;;  %v638_v63 = vadd.f32 %v1552_v2, %v637_v55  ;;  %v718_v0 = vadd.f32 %v1552_v2, %v717_v56 }
 0x11b   : > { %v808_v61 = vadd.f32 %v807_v57, %v806_v53  ;;  %v845_v62 = vadd.f32 %v844_v58, %v843_v54  ;;  %v809_v1 = vsel %vm799_vm3, %v771_v47, 0.0  ;;  %v846_v3 = vsel %vm799_vm3, %v787_v48, 0.0 }
 0x11c   : > { %v773_v4 = vmax.f32 %v643_v59, 0.0  ;;  %v789_v5 = vmax.f32 %v723_v60, 0.0  ;;  %v1153_v6 = vpop.f32.mrb[8].mxu0  ;;  %v1177_v7 = vpop.f32.mrb[8].mxu1  ;;  %v772_v8 = vmax.f32 %v638_v63, 0.0  ;;  %v788_v10 = vmax.f32 %v718_v0, 0.0 }
 0x11d   : > { %v810_v9 = vadd.f32 %v809_v1, %v808_v61  ;;  %v847_v11 = vadd.f32 %v846_v3, %v845_v62  ;;  %v647_v12 = vpop.f32.mrb[9].mxu0  ;;  %v727_v13 = vpop.f32.mrb[9].mxu1  ;;  %v653_v16 = vadd.f32 %v1153_v6, %v1552_v2  ;;  %v733_v17 = vadd.f32 %v1177_v7, %v1552_v2 }
 0x11e   : > { %v813_v14 = vsel %vm799_vm3, %v773_v4, 0.0  ;;  %v850_v15 = vsel %vm799_vm3, %v789_v5, 0.0  ;;  %v811_v18 = vsel %vm799_vm3, %v772_v8, 0.0  ;;  %v848_v19 = vsel %vm799_vm3, %v788_v10, 0.0 }
 0x11f   : > { %v648_v20 = vadd.f32 %v1552_v2, %v647_v12  ;;  %v728_v21 = vadd.f32 %v1552_v2, %v727_v13  ;;  %v812_v22 = vadd.f32 %v811_v18, %v810_v9  ;;  %v849_v23 = vadd.f32 %v848_v19, %v847_v11 }
 0x120   : > { %v775_v24 = vmax.f32 %v653_v16, 0.0  ;;  %v791_v25 = vmax.f32 %v733_v17, 0.0  ;;  %v1156_v26 = vpop.f32.mrb[10].mxu0  ;;  %v1180_v27 = vpop.f32.mrb[10].mxu1 }
 0x121   : > { %v774_v28 = vmax.f32 %v648_v20, 0.0  ;;  %v790_v29 = vmax.f32 %v728_v21, 0.0  ;;  %v663_v30 = vadd.f32 %v1156_v26, %v1552_v2  ;;  %v743_v31 = vadd.f32 %v1180_v27, %v1552_v2  ;;  %v657_v32 = vpop.f32.mrb[11].mxu0  ;;  %v737_v33 = vpop.f32.mrb[11].mxu1 }
 0x122   : > { %v814_v34 = vadd.f32 %v813_v14, %v812_v22  ;;  %v851_v35 = vadd.f32 %v850_v15, %v849_v23  ;;  %v658_v42 = vadd.f32 %v1552_v2, %v657_v32  ;;  %v738_v43 = vadd.f32 %v1552_v2, %v737_v33 }
 0x123   : > { %v815_v36 = vsel %vm799_vm3, %v774_v28, 0.0  ;;  %v852_v37 = vsel %vm799_vm3, %v790_v29, 0.0  ;;  %v777_v38 = vmax.f32 %v663_v30, 0.0  ;;  %v793_v39 = vmax.f32 %v743_v31, 0.0 }
 0x124   : > { %v816_v40 = vadd.f32 %v815_v36, %v814_v34  ;;  %v853_v41 = vadd.f32 %v852_v37, %v851_v35  ;;  %v1159_v44 = vpop.f32.mrb[12].mxu0  ;;  %v1183_v45 = vpop.f32.mrb[12].mxu1  ;;  %v817_v46 = vsel %vm799_vm3, %v775_v24, 0.0  ;;  %v854_v47 = vsel %vm799_vm3, %v791_v25, 0.0 }
 0x125   : > { %v673_v48 = vadd.f32 %v1159_v44, %v1552_v2  ;;  %v753_v49 = vadd.f32 %v1183_v45, %v1552_v2  ;;  %v667_v50 = vpop.f32.mrb[13].mxu0  ;;  %v747_v51 = vpop.f32.mrb[13].mxu1  ;;  %v776_v52 = vmax.f32 %v658_v42, 0.0  ;;  %v792_v54 = vmax.f32 %v738_v43, 0.0  ;;  %v798_v45 = vld [vmem:[#allocation2] sm:$0x3] }
 0x126   : > { %v818_v53 = vadd.f32 %v817_v46, %v816_v40  ;;  %v855_v55 = vadd.f32 %v854_v47, %v853_v41  ;;  %v668_v56 = vadd.f32 %v1552_v2, %v667_v50  ;;  %v748_v57 = vadd.f32 %v1552_v2, %v747_v51  ;;  %v889_v50 = vld [vmem:[%s1684_s3 + $0x8] sm:$0xff] (!%p1091_p10)  ;;  %v890_v51 = vld [vmem:[%s1684_s3 + $0x10] sm:$0xff] (!%p1091_p10) }
 0x127   : > { %v821_v58 = vsel %vm799_vm3, %v777_v38, 0.0  ;;  %v858_v59 = vsel %vm799_vm3, %v793_v39, 0.0  ;;  %v819_v60 = vsel %vm799_vm3, %v776_v52, 0.0  ;;  %v856_v61 = vsel %vm799_vm3, %v792_v54, 0.0  ;;  %v891_v54 = vld [vmem:[%s1684_s3 + $0x18] sm:$0xff] (!%p1091_p10) }
 0x128   : > { %v1162_v62 = vpop.f32.mrb[14].mxu0  ;;  %v1186_v63 = vpop.f32.mrb[14].mxu1  ;;  %v820_v0 = vadd.f32 %v819_v60, %v818_v53  ;;  %v857_v1 = vadd.f32 %v856_v61, %v855_v55  ;;  %v779_v3 = vmax.f32 %v673_v48, 0.0  ;;  %v795_v4 = vmax.f32 %v753_v49, 0.0  ;;  %v888_v49 = vld [vmem:[%s1684_s3] sm:$0xff] (!%p1091_p10) }
 0x129   : > { %v677_v5 = vpop.f32.mrb[15].mxu0  ;;  %v757_v6 = vpop.f32.mrb[15].mxu1  ;;  %v778_v7 = vmax.f32 %v668_v56, 0.0  ;;  %v794_v8 = vmax.f32 %v748_v57, 0.0  ;;  %v683_v9 = vadd.f32 %v1162_v62, %v1552_v2  ;;  %v763_v10 = vadd.f32 %v1186_v63, %v1552_v2 }
 0x12a   : > { %v822_v11 = vadd.f32 %v821_v58, %v820_v0  ;;  %v859_v12 = vadd.f32 %v858_v59, %v857_v1  ;;  %v678_v13 = vadd.f32 %v1552_v2, %v677_v5  ;;  %v758_v14 = vadd.f32 %v1552_v2, %v757_v6  ;;  %v1092_v59 = vld [vmem:[%s1685_s4] ss:$0 sm:$0xff] (!%p1091_p10) }
 0x12b   : > { %v823_v15 = vsel %vm799_vm3, %v778_v7, 0.0  ;;  %v860_v16 = vsel %vm799_vm3, %v794_v8, 0.0  ;;  %v825_v21 = vsel %vm799_vm3, %v779_v3, 0.0  ;;  %v862_v22 = vsel %vm799_vm3, %v795_v4, 0.0 }
 0x12c   : > { %v824_v17 = vadd.f32 %v823_v15, %v822_v11  ;;  %v861_v18 = vadd.f32 %v860_v16, %v859_v12  ;;  %v780_v19 = vmax.f32 %v678_v13, 0.0  ;;  %v796_v20 = vmax.f32 %v758_v14, 0.0 }
 0x12d   : > { %v781_v23 = vmax.f32 %v683_v9, 0.0  ;;  %v797_v24 = vmax.f32 %v763_v10, 0.0  ;;  %v1330_v52 = vmov (!%p1091_p10), 0.0|0.0   ;;  %v1199_v53 = vpack.c.bf16 (!%p1091_p10), %v889_v50, %v888_v49 }
 0x12e   : > { %v826_v25 = vadd.f32 %v825_v21, %v824_v17  ;;  %v827_v26 = vsel %vm799_vm3, %v780_v19, 0.0  ;;  %v863_v27 = vadd.f32 %v862_v22, %v861_v18  ;;  %v864_v2 = vsel %vm799_vm3, %v796_v20, 0.0  ;;  %1198 = vmatprep.subr.bf16.mxu0 (!%p1091_p10), %v1330_v52 }
 0x12f   : > { %v829_v30 = vsel %vm799_vm3, %v781_v23, 0.0  ;;  %v866_v31 = vsel %vm799_vm3, %v797_v24, 0.0  ;;  %v1332_v55 = vmov (!%p1091_p10), 0.0   ;;  %1200 = vmatpush3.bf16.msra.mxu0 (!%p1091_p10), %v1199_v53  ;;  %v1202_v56 = vpack.c.bf16 (!%p1091_p10), %v891_v54, %v890_v51 }
 0x130   : > { %v828_v28 = vadd.f32 %v827_v26, %v826_v25  ;;  %v865_v29 = vadd.f32 %v864_v2, %v863_v27  ;;  %1195 = vmatprep.mubr.msk.f32.mxu0 (!%p1091_p10), %vm1331_vm6, %v1332_v55  ;;  %1201 = vmatprep.subr.bf16.mxu0 (!%p1091_p10), %v1330_v52 }
 0x132   : > { %v830_v32 = vadd.f32 %v829_v30, %v828_v28  ;;  %v867_v33 = vadd.f32 %v866_v31, %v865_v29 }
 0x133   : > { %1203 = vmatpush3.bf16.msra.mxu0 (!%p1091_p10), %v1202_v56 }
 0x134   : > { %v831_v34 = vrot.slane %v830_v32, 4  ;;  %v868_v35 = vrot.slane %v867_v33, 4 }
 0x136   : > { %v832_v36 = vadd.f32 %v831_v34, %v830_v32  ;;  %v869_v37 = vadd.f32 %v868_v35, %v867_v33 }
 0x138   : > { %v833_v38 = vrot.slane %v832_v36, 2  ;;  %v870_v39 = vrot.slane %v869_v37, 2 }
 0x13a   : > { %v834_v40 = vadd.f32 %v833_v38, %v832_v36  ;;  %v871_v41 = vadd.f32 %v870_v39, %v869_v37 }
 0x13c   : > { %v835_v42 = vrot.slane %v834_v40, 1  ;;  %v872_v43 = vrot.slane %v871_v41, 1 }
 0x13d   : > { %885 = sbr.rel (%p1091_p10) target bundleno = 708 (0x2c4), region = 86 }
 0x13e   : > { %v836_v44 = vadd.f32 %v835_v42, %v834_v40  ;;  %v873_v46 = vadd.f32 %v872_v43, %v871_v41 }
 0x140   : > { %v877_v47 = vsel %vm876_vm4, %v873_v46, %v836_v44 }
 0x141   : > { %v879_v48 = vadd.f32 %v877_v47, %v798_v45 }
 0x143   : > { %881 = vst.msk [vmem:[#allocation2] sm:$0x3] %vm880_vm5, %v879_v48 }
 0x14a   : > { %v886_v57 = vld [vmem:[#allocation2] sm:$0x3] }
 0x14b   : > { %v887_v58 = vmul.f32 0.00390625, %v886_v57 }
 0x14d   : > { %1196 = vmatmul.mubr.msk.f32.vlgmr.msra.gmra.mrb[0].mxu0 %vm799_vm3, %v887_v58 }
 0x220   : > { %v968_v60 = vpop.f32.mrb[0].mxu0 }
 0x221   : > { %v969_v61 = vadd.f32 %v1092_v59, %v968_v60  ;;  %v1197_v62 = vpop.f32.mrb[1].mxu0 }
 0x223   : > { %v972_v63 = vmul.f32 %v969_v61, %v969_v61 }
 0x225   : > { %v973_v0 = vsel %vm880_vm5, %v972_v63, 0.0 }
 0x226   : > { %974 = vadd.xlane.f32.xlu0 %v973_v0 }
 0x2b3   : > { %v975_v1 = vpop.xlane.xlu0 %974 }
 0x2b4   : > { %v976_v3 = vmax.f32 %v975_v1, 1e-24 }
 0x2b6   : > { %1257 = vrsqrt.f32 %v976_v3 }
 0x2c0   : > { %v1258_v4 = vpop.eup %1257 }
 0x2c1   : > { %v978_v5 = vmul.f32 %v1258_v4, %v969_v61 }
 0x2c3   : > { %979 = vst.msk [vmem:[#allocation4] sm:$0x3] %vm880_vm5, %v978_v5 }
 0x2c4 PF: > { %p1640_p11 = scmp.eq.s32.totalorder %s1048_s23, 1  ;;  %s1333_s9 = smov [#allocation4]  }
 0x2c5   : > { %s989_s10 = sshll.u32 %s1333_s9, 4  ;;  %s990_s10 = int_to_ptr.vmem [resolvable:$true] %s989_s10 }
 0x2c6   : > { %s1259_s11 = scalar_lea.vmem %s990_s10, 32  ;;  %p1266_p1 = scmp.lt.s32.totalorder %s990_s10, %s990_s10 }
 0x2c7   : > { %p1260_p12 = scmp.ne.s32.totalorder %s990_s10, %s1259_s11  ;;  %p1267_p2 = scmp.lt.s32.totalorder %s1259_s11, %s1259_s11 }
 0x2c9   : > { %p1261_p13 = pnand %p1260_p12, %p1640_p11  ;;  %p1268_p3 = por %p1267_p2, %p1266_p1 }
 0x2cb   : > { %p1262_p0 = pneg %p1261_p13 }
 0x2cd   : > { %p1269_p4 = pnand %p1268_p3, %p1262_p0 }
 0x2cf   : > { %1272 = shalt.err (!%p1269_p4)
}
 0x2d0   : > { %s1273_s23 = scalar_lea.hbm %s1686_s5, 32 }
 0x2d1   : > { %p1274_p5 = scmp.ne.s32.totalorder %s1686_s5, %s1273_s23  ;;  %p1279_p8 = scmp.lt.u32.totalorder %s1273_s23, %s1686_s5 }
 0x2d3   : > { %p1275_p6 = pnand %p1274_p5, %p1640_p11 }
 0x2d5   : > { %p1276_p7 = pneg %p1275_p6 }
 0x2d7   : > { %p1281_p9 = pnand %p1279_p8, %p1276_p7 }
 0x2d9   : > { %1284 = shalt.err (!%p1281_p9)
}
 0x2da   : > { %1207 = dma.vmem_to_hbm [thread:$0]  (%p1640_p11), %s990_s10, 32, %s1686_s5, [#allocation5]  }
 0x2db   : > { %1306 = dma.done.wait (%p1640_p11), [#allocation5], 32  }
 0x2dc   : > { %1308 = vsyncadd (%p1640_p11), [#allocation5], 4294967264 }
 0x2dd PF: > { %s16_s22 = sadd.s32 1, %s1327_s22   ;;  %s1688_s18 = smov %s1315_s19 }
 0x2de   : > { %p13_p10 = scmp.ge.s32.totalorder %s16_s22, 4   ;;  %s1689_s19 = smov %s1400_s27 }
 0x2df   : > { %s1690_s20 = smov %s1323_s21  ;;  %s1691_s21 = smov %s1693_s24 }
 0x2e0   :  { %15 = sbr.rel (!%p13_p10) target bundleno = 3 (0x3), region = 119 }
 0x2e7   :  { %1002 = vsyncpa [#allocation5], 1 }
 0x2e8   :  { %1004 = vsyncpa [#allocation5 + $0x1], 1 }

</bundles_post_ra>
